<compile_context>
chip_gen: v7x
topology: tpu7x:2x2x1
jax: 0.10.0
libtpu: 0.0.40
codegen_flags: <defaults>
</compile_context>

<pallas_src>
import functools

import jax
import jax.numpy as jnp
from jax import lax
from jax.experimental import pallas as pl
from jax.experimental.pallas import tpu as pltpu


def _attention_kernel(xq_ref, xkv_ref, wqkv_ref, wout_ref, b_ref, o_ref,
                      heads_out_ref, *, heads, dim):
    """One (batch element, query tile) grid step.

    xq_ref:        (1, TQ, dim)  query rows of x for this tile
    xkv_ref:       (1, N,  dim)  full sequence of x (source of K / V)
    wqkv_ref:      (dim, 3*dim)  QKV weight, pre-transposed; scale folded in Q
    wout_ref:      (dim, dim)    output-proj weight, pre-transposed
    b_ref:         (1, dim)      output-proj bias (f32)
    o_ref:         (1, TQ, dim)  output tile
    heads_out_ref: (TQ, dim)     VMEM scratch; head h owns cols [h*d, (h+1)*d)
    """
    d = dim // heads
    cdt = xq_ref.dtype  # compute/operand dtype; accumulation is always f32

    xq = xq_ref[0]            # (TQ, dim)
    xkv = xkv_ref[0]          # (N,  dim)

    # Projections on the MXU with f32 accumulation. The module's `scale` is
    # already folded into the Q columns of wqkv, so scores need no multiply.
    q_all = jnp.dot(xq, wqkv_ref[:, 0:dim],
                    preferred_element_type=jnp.float32).astype(cdt)   # (TQ, dim)
    kv_all = jnp.dot(xkv, wqkv_ref[:, dim:3 * dim],
                     preferred_element_type=jnp.float32).astype(cdt)  # (N, 2*dim)

    # Per-head attention. `heads` is static -> unrolled; each head writes its
    # (TQ, d) result directly into its column slice of the VMEM scratch, so
    # there is no head_outs list and no concatenate / relayout at the end.
    for h in range(heads):
        sl = slice(h * d, (h + 1) * d)
        q = q_all[:, sl]                                    # (TQ, d)
        k = kv_all[:, sl]                                   # (N,  d)
        v = kv_all[:, dim + h * d: dim + (h + 1) * d]       # (N,  d)

        # scores[i, j] = sum_c q[i, c] * k[j, c]   (no explicit k.T)
        dots = lax.dot_general(q, k, (((1,), (1,)), ((), ())),
                               preferred_element_type=jnp.float32)    # (TQ, N)

        # Numerically stable softmax along the last axis (f32).
        m = jnp.max(dots, axis=-1, keepdims=True)
        e = jnp.exp(dots - m)
        s = jnp.sum(e, axis=-1, keepdims=True)
        r = pl.reciprocal(s, approx=True)      # EUP slot
        r = r * (2.0 - s * r)                  # one Newton step -> ~f32 accuracy
        attn = e * r

        # out_h = attn @ v (contraction over N -> MXU-friendly K dimension).
        out_h = jnp.dot(attn.astype(cdt), v,
                        preferred_element_type=jnp.float32)           # (TQ, d)
        heads_out_ref[:, sl] = out_h.astype(cdt)

    # Output projection: Linear(dim, dim) + bias. Dropout(p=0.0) == identity.
    concat = heads_out_ref[...]                                       # (TQ, dim)
    out = jnp.dot(concat, wout_ref[...], preferred_element_type=jnp.float32)
    out = out + b_ref[...]
    o_ref[0] = out.astype(o_ref.dtype)


def _pick_q_tile(n):
    """Full sequence for short n, else an (8,*)-aligned query tile so the grid
    has enough steps to pipeline DMA / use both cores."""
    if n <= 512:
        return n
    for t in (512, 256, 128):
        if n % t == 0:
            return t
    return n


def _estimate_vmem_bytes(n, tq, dim, itemsize):
    dbl = 2  # default double-buffering of pipelined blocks
    blocks = (tq * dim            # x query tile
              + n * dim           # x full sequence
              + dim * 3 * dim     # Wqkv^T
              + dim * dim         # Wout^T
              + 8 * max(dim, 128) # bias (padded)
              + tq * dim          # output tile
              ) * itemsize * dbl
    scratch = tq * dim * itemsize
    interm = (tq * 3 * dim + n * 2 * dim + 4 * tq * n) * 4  # f32 temporaries
    return blocks + scratch + interm


def prepare_attention_params(w_qkv, w_out, b_out, *, dim, param_dtype=jnp.float32):
    """One-time weight preprocessing (call once, NOT per forward):
       - transpose nn.Linear weights to (in, out) so the kernel does x @ W,
       - fold the module's scale = dim**-0.5 into the Q columns,
       - cast to the desired compute dtype (bf16 recommended on v6e/v7x)."""
    scale = dim ** (-0.5)
    wqkv_t = jnp.asarray(w_qkv, jnp.float32).T            # (dim, 3*dim)
    wqkv_t = wqkv_t.at[:, :dim].multiply(scale)           # fold scale into Q
    wout_t = jnp.asarray(w_out, jnp.float32).T            # (dim, dim)
    bout2d = jnp.asarray(b_out, jnp.float32).reshape(1, dim)
    return wqkv_t.astype(param_dtype), wout_t.astype(param_dtype), bout2d


def attention_pallas(x, wqkv_t, wout_t, bout2d, *, heads, q_tile=None):
    """x: (b, n, dim); wqkv_t: (dim, 3*dim); wout_t: (dim, dim); bout2d: (1, dim)."""
    b, n, dim = x.shape
    assert dim % heads == 0
    assert wqkv_t.shape == (dim, 3 * dim)
    assert wout_t.shape == (dim, dim)
    assert bout2d.shape == (1, dim)

    cdt = x.dtype
    # No forced f32 upcast: operands stay in the input dtype (bf16 in practice),
    # accumulation happens in f32 inside the kernel. astype is a no-op when the
    # params were already prepared in the matching dtype.
    wqkv_t = wqkv_t.astype(cdt)
    wout_t = wout_t.astype(cdt)
    bout2d = bout2d.astype(jnp.float32)

    tq = q_tile if q_tile is not None else _pick_q_tile(n)
    assert n % tq == 0
    nq = n // tq

    kernel = functools.partial(_attention_kernel, heads=heads, dim=dim)

    est = _estimate_vmem_bytes(n, tq, dim, jnp.dtype(cdt).itemsize)
    vmem_limit = int(min(64 * 1024 * 1024, max(32 * 1024 * 1024, 2 * est)))

    return pl.pallas_call(
        kernel,
        out_shape=jax.ShapeDtypeStruct((b, n, dim), cdt),
        grid_spec=pltpu.PrefetchScalarGridSpec(
            num_scalar_prefetch=0,
            grid=(b, nq),
            in_specs=[
                pl.BlockSpec((1, tq, dim), lambda bi, qi: (bi, qi, 0)),   # x: q tile
                pl.BlockSpec((1, n, dim), lambda bi, qi: (bi, 0, 0)),     # x: full (K/V)
                pl.BlockSpec((dim, 3 * dim), lambda bi, qi: (0, 0)),      # Wqkv^T (Q scaled)
                pl.BlockSpec((dim, dim), lambda bi, qi: (0, 0)),          # Wout^T
                pl.BlockSpec((1, dim), lambda bi, qi: (0, 0)),            # bias
            ],
            out_specs=pl.BlockSpec((1, tq, dim), lambda bi, qi: (bi, qi, 0)),
            scratch_shapes=[pltpu.VMEM((tq, dim), cdt)],
        ),
        compiler_params=pltpu.CompilerParams(
            dimension_semantics=("parallel", "parallel"),
            vmem_limit_bytes=vmem_limit),
    )(x, x, wqkv_t, wout_t, bout2d)


def attention_reference(x, w_qkv, w_out, b_out, *, heads):
    """Pure-JAX reference mirroring the PyTorch forward (mask=None)."""
    b, n, dim = x.shape
    d = dim // heads
    scale = dim ** (-0.5)
    qkv = x @ w_qkv.T                                   # (b, n, 3*dim)
    q, k, v = jnp.split(qkv, 3, axis=-1)

    def split_heads(t):                                 # b n (h d) -> b h n d
        return t.reshape(b, n, heads, d).transpose(0, 2, 1, 3)

    q, k, v = map(split_heads, (q, k, v))
    dots = jnp.einsum('bhid,bhjd->bhij', q, k) * scale
    attn = jax.nn.softmax(dots, axis=-1)
    out = jnp.einsum('bhij,bhjd->bhid', attn, v)
    out = out.transpose(0, 2, 1, 3).reshape(b, n, dim)  # b h n d -> b n (h d)
    return out @ w_out.T + b_out


def _run_case(key, batch, seq, dim, heads, q_tile, atol):
    k_x, k_qkv, k_out, k_b = jax.random.split(key, 4)
    x = jax.random.normal(k_x, (batch, seq, dim), dtype=jnp.float32)
    w_qkv = jax.random.normal(k_qkv, (3 * dim, dim), dtype=jnp.float32) * 0.05
    w_out = jax.random.normal(k_out, (dim, dim), dtype=jnp.float32) * 0.05
    b_out = jax.random.normal(k_b, (dim,), dtype=jnp.float32) * 0.05

    # One-time parameter preparation (hoisted out of the forward pass).
    wqkv_t, wout_t, bout2d = prepare_attention_params(
        w_qkv, w_out, b_out, dim=dim, param_dtype=x.dtype)

    y = attention_pallas(x, wqkv_t, wout_t, bout2d, heads=heads, q_tile=q_tile)
    y = jax.block_until_ready(y)

    y_ref = attention_reference(x, w_qkv, w_out, b_out, heads=heads)
    assert y.shape == (batch, seq, dim)
    assert jnp.allclose(y, y_ref, atol=atol, rtol=atol), \
        f"mismatch vs reference (b={batch}, n={seq}, dim={dim})"


if __name__ == "__main__":
    key = jax.random.PRNGKey(0)
    k1, k2 = jax.random.split(key)

    # Small config matching the original test (single query tile).
    _run_case(k1, batch=2, seq=8, dim=32, heads=8, q_tile=None, atol=1e-4)

    # Larger, lane-dense config exercising the (batch, query-tile) grid
    # (nq = 2 query tiles of 128 rows each).
    _run_case(k2, batch=2, seq=256, dim=128, heads=8, q_tile=128, atol=5e-4)

    print("KERNEL_OK")
</pallas_src>

<mosaic_0001>
module attributes {stable_mosaic.version = 11 : i64} {
  func.func @_attention_kernel(%arg0: i32, %arg1: i32, %arg2: memref<1x8x32xf32, #tpu.memory_space<vmem>>, %arg3: memref<1x8x32xf32, #tpu.memory_space<vmem>>, %arg4: memref<32x96xf32, #tpu.memory_space<vmem>>, %arg5: memref<32x32xf32, #tpu.memory_space<vmem>>, %arg6: memref<1x32xf32, #tpu.memory_space<vmem>>, %arg7: memref<1x8x32xf32, #tpu.memory_space<vmem>>, %arg8: memref<8x32xf32, #tpu.memory_space<vmem>>) attributes {dimension_semantics = [#tpu.dimension_semantics<parallel>, #tpu.dimension_semantics<parallel>], iteration_bounds = array<i64: 2, 1>, scalar_prefetch = 0 : i64, scratch_operands = 1 : i64, tpu.core_type = #tpu.core_type<tc>, window_params = [{transform_indices = @transform_0, window_bounds = array<i64: 1, 8, 32>}, {transform_indices = @transform_1, window_bounds = array<i64: 1, 8, 32>}, {pipeline_mode = #tpu.pipeline_mode<synchronous>, transform_indices = @transform_2, window_bounds = array<i64: 32, 96>}, {pipeline_mode = #tpu.pipeline_mode<synchronous>, transform_indices = @transform_3, window_bounds = array<i64: 32, 32>}, {pipeline_mode = #tpu.pipeline_mode<synchronous>, transform_indices = @transform_4, window_bounds = array<i64: 1, 32>}, {transform_indices = @transform_5, window_bounds = array<i64: 1, 8, 32>}]} {
    %c0 = arith.constant 0 : index
    %c0_0 = arith.constant 0 : index
    %c0_1 = arith.constant 0 : index
    %0 = vector.load %arg2[%c0, %c0_0, %c0_1] : memref<1x8x32xf32, #tpu.memory_space<vmem>>, vector<1x8x32xf32>
    %1 = vector.shape_cast %0 : vector<1x8x32xf32> to vector<8x32xf32>
    %c0_2 = arith.constant 0 : index
    %c0_3 = arith.constant 0 : index
    %c0_4 = arith.constant 0 : index
    %2 = vector.load %arg3[%c0_2, %c0_3, %c0_4] : memref<1x8x32xf32, #tpu.memory_space<vmem>>, vector<1x8x32xf32>
    %3 = vector.shape_cast %2 : vector<1x8x32xf32> to vector<8x32xf32>
    %c0_5 = arith.constant 0 : index
    %c0_6 = arith.constant 0 : index
    %4 = vector.load %arg4[%c0_5, %c0_6] : memref<32x96xf32, #tpu.memory_space<vmem>>, vector<32x32xf32>
    %cst = arith.constant dense<0.000000e+00> : vector<8x32xf32>
    %5 = tpu.matmul %1, %4, %cst {dimension_numbers = #tpu.dot_dimension_numbers<[1], [0], [0], [1], [0, 0, 1, 1], [], []>} : vector<8x32xf32>, vector<32x32xf32>, vector<8x32xf32> -> vector<8x32xf32>
    %c0_7 = arith.constant 0 : index
    %c32 = arith.constant 32 : index
    %6 = vector.load %arg4[%c0_7, %c32] : memref<32x96xf32, #tpu.memory_space<vmem>>, vector<32x64xf32>
    %cst_8 = arith.constant dense<0.000000e+00> : vector<8x64xf32>
    %7 = tpu.matmul %3, %6, %cst_8 {dimension_numbers = #tpu.dot_dimension_numbers<[1], [0], [0], [1], [0, 0, 1, 1], [], []>} : vector<8x32xf32>, vector<32x64xf32>, vector<8x64xf32> -> vector<8x64xf32>
    %8 = vector.extract_strided_slice %5 {offsets = [0, 0], sizes = [8, 4], strides = [1, 1]} : vector<8x32xf32> to vector<8x4xf32>
    %9 = vector.extract_strided_slice %7 {offsets = [0, 0], sizes = [8, 4], strides = [1, 1]} : vector<8x64xf32> to vector<8x4xf32>
    %10 = vector.extract_strided_slice %7 {offsets = [0, 32], sizes = [8, 4], strides = [1, 1]} : vector<8x64xf32> to vector<8x4xf32>
    %cst_9 = arith.constant dense<0.000000e+00> : vector<8x8xf32>
    %11 = tpu.matmul %8, %9, %cst_9 {dimension_numbers = #tpu.dot_dimension_numbers<[1], [1], [0], [0], [0, 0, 1, 0], [], []>} : vector<8x4xf32>, vector<8x4xf32>, vector<8x8xf32> -> vector<8x8xf32>
    %cst_10 = arith.constant dense<0xFF800000> : vector<8xf32>
    %12 = vector.multi_reduction <maximumf>, %11, %cst_10 [1] : vector<8x8xf32> to vector<8xf32>
    %13 = vector.shape_cast %12 : vector<8xf32> to vector<8x1xf32>
    %14 = vector.broadcast %13 : vector<8x1xf32> to vector<8x8xf32>
    %15 = arith.subf %11, %14 : vector<8x8xf32>
    %16 = math.exp %15 : vector<8x8xf32>
    %cst_11 = arith.constant dense<0.000000e+00> : vector<8xf32>
    %17 = vector.multi_reduction <add>, %16, %cst_11 [1] : vector<8x8xf32> to vector<8xf32>
    %18 = vector.shape_cast %17 : vector<8xf32> to vector<8x1xf32>
    %19 = tpu.reciprocal %18 {approx = true} : vector<8x1xf32> -> vector<8x1xf32>
    %20 = arith.mulf %18, %19 : vector<8x1xf32>
    %cst_12 = arith.constant 2.000000e+00 : f32
    %21 = vector.broadcast %cst_12 : f32 to vector<8x1xf32>
    %22 = arith.subf %21, %20 : vector<8x1xf32>
    %23 = arith.mulf %19, %22 : vector<8x1xf32>
    %24 = vector.broadcast %23 : vector<8x1xf32> to vector<8x8xf32>
    %25 = arith.mulf %16, %24 : vector<8x8xf32>
    %cst_13 = arith.constant dense<0.000000e+00> : vector<8x4xf32>
    %26 = tpu.matmul %25, %10, %cst_13 {dimension_numbers = #tpu.dot_dimension_numbers<[1], [0], [0], [1], [0, 0, 1, 1], [], []>} : vector<8x8xf32>, vector<8x4xf32>, vector<8x4xf32> -> vector<8x4xf32>
    %c0_14 = arith.constant 0 : index
    %c0_15 = arith.constant 0 : index
    %27 = vector.load %arg8[%c0_14, %c0_15] : memref<8x32xf32, #tpu.memory_space<vmem>>, vector<8x4xf32>
    tpu.vector_store %arg8[%c0_14, %c0_15], %26 {strides = array<i32>} : memref<8x32xf32, #tpu.memory_space<vmem>>, vector<8x4xf32>,
    %28 = vector.extract_strided_slice %5 {offsets = [0, 4], sizes = [8, 4], strides = [1, 1]} : vector<8x32xf32> to vector<8x4xf32>
    %29 = vector.extract_strided_slice %7 {offsets = [0, 4], sizes = [8, 4], strides = [1, 1]} : vector<8x64xf32> to vector<8x4xf32>
    %30 = vector.extract_strided_slice %7 {offsets = [0, 36], sizes = [8, 4], strides = [1, 1]} : vector<8x64xf32> to vector<8x4xf32>
    %cst_16 = arith.constant dense<0.000000e+00> : vector<8x8xf32>
    %31 = tpu.matmul %28, %29, %cst_16 {dimension_numbers = #tpu.dot_dimension_numbers<[1], [1], [0], [0], [0, 0, 1, 0], [], []>} : vector<8x4xf32>, vector<8x4xf32>, vector<8x8xf32> -> vector<8x8xf32>
    %cst_17 = arith.constant dense<0xFF800000> : vector<8xf32>
    %32 = vector.multi_reduction <maximumf>, %31, %cst_17 [1] : vector<8x8xf32> to vector<8xf32>
    %33 = vector.shape_cast %32 : vector<8xf32> to vector<8x1xf32>
    %34 = vector.broadcast %33 : vector<8x1xf32> to vector<8x8xf32>
    %35 = arith.subf %31, %34 : vector<8x8xf32>
    %36 = math.exp %35 : vector<8x8xf32>
    %cst_18 = arith.constant dense<0.000000e+00> : vector<8xf32>
    %37 = vector.multi_reduction <add>, %36, %cst_18 [1] : vector<8x8xf32> to vector<8xf32>
    %38 = vector.shape_cast %37 : vector<8xf32> to vector<8x1xf32>
    %39 = tpu.reciprocal %38 {approx = true} : vector<8x1xf32> -> vector<8x1xf32>
    %40 = arith.mulf %38, %39 : vector<8x1xf32>
    %cst_19 = arith.constant 2.000000e+00 : f32
    %41 = vector.broadcast %cst_19 : f32 to vector<8x1xf32>
    %42 = arith.subf %41, %40 : vector<8x1xf32>
    %43 = arith.mulf %39, %42 : vector<8x1xf32>
    %44 = vector.broadcast %43 : vector<8x1xf32> to vector<8x8xf32>
    %45 = arith.mulf %36, %44 : vector<8x8xf32>
    %cst_20 = arith.constant dense<0.000000e+00> : vector<8x4xf32>
    %46 = tpu.matmul %45, %30, %cst_20 {dimension_numbers = #tpu.dot_dimension_numbers<[1], [0], [0], [1], [0, 0, 1, 1], [], []>} : vector<8x8xf32>, vector<8x4xf32>, vector<8x4xf32> -> vector<8x4xf32>
    %c0_21 = arith.constant 0 : index
    %c4 = arith.constant 4 : index
    %47 = vector.load %arg8[%c0_21, %c4] : memref<8x32xf32, #tpu.memory_space<vmem>>, vector<8x4xf32>
    tpu.vector_store %arg8[%c0_21, %c4], %46 {strides = array<i32>} : memref<8x32xf32, #tpu.memory_space<vmem>>, vector<8x4xf32>,
    %48 = vector.extract_strided_slice %5 {offsets = [0, 8], sizes = [8, 4], strides = [1, 1]} : vector<8x32xf32> to vector<8x4xf32>
    %49 = vector.extract_strided_slice %7 {offsets = [0, 8], sizes = [8, 4], strides = [1, 1]} : vector<8x64xf32> to vector<8x4xf32>
    %50 = vector.extract_strided_slice %7 {offsets = [0, 40], sizes = [8, 4], strides = [1, 1]} : vector<8x64xf32> to vector<8x4xf32>
    %cst_22 = arith.constant dense<0.000000e+00> : vector<8x8xf32>
    %51 = tpu.matmul %48, %49, %cst_22 {dimension_numbers = #tpu.dot_dimension_numbers<[1], [1], [0], [0], [0, 0, 1, 0], [], []>} : vector<8x4xf32>, vector<8x4xf32>, vector<8x8xf32> -> vector<8x8xf32>
    %cst_23 = arith.constant dense<0xFF800000> : vector<8xf32>
    %52 = vector.multi_reduction <maximumf>, %51, %cst_23 [1] : vector<8x8xf32> to vector<8xf32>
    %53 = vector.shape_cast %52 : vector<8xf32> to vector<8x1xf32>
    %54 = vector.broadcast %53 : vector<8x1xf32> to vector<8x8xf32>
    %55 = arith.subf %51, %54 : vector<8x8xf32>
    %56 = math.exp %55 : vector<8x8xf32>
    %cst_24 = arith.constant dense<0.000000e+00> : vector<8xf32>
    %57 = vector.multi_reduction <add>, %56, %cst_24 [1] : vector<8x8xf32> to vector<8xf32>
    %58 = vector.shape_cast %57 : vector<8xf32> to vector<8x1xf32>
    %59 = tpu.reciprocal %58 {approx = true} : vector<8x1xf32> -> vector<8x1xf32>
    %60 = arith.mulf %58, %59 : vector<8x1xf32>
    %cst_25 = arith.constant 2.000000e+00 : f32
    %61 = vector.broadcast %cst_25 : f32 to vector<8x1xf32>
    %62 = arith.subf %61, %60 : vector<8x1xf32>
    %63 = arith.mulf %59, %62 : vector<8x1xf32>
    %64 = vector.broadcast %63 : vector<8x1xf32> to vector<8x8xf32>
    %65 = arith.mulf %56, %64 : vector<8x8xf32>
    %cst_26 = arith.constant dense<0.000000e+00> : vector<8x4xf32>
    %66 = tpu.matmul %65, %50, %cst_26 {dimension_numbers = #tpu.dot_dimension_numbers<[1], [0], [0], [1], [0, 0, 1, 1], [], []>} : vector<8x8xf32>, vector<8x4xf32>, vector<8x4xf32> -> vector<8x4xf32>
    %c0_27 = arith.constant 0 : index
    %c8 = arith.constant 8 : index
    %67 = vector.load %arg8[%c0_27, %c8] : memref<8x32xf32, #tpu.memory_space<vmem>>, vector<8x4xf32>
    tpu.vector_store %arg8[%c0_27, %c8], %66 {strides = array<i32>} : memref<8x32xf32, #tpu.memory_space<vmem>>, vector<8x4xf32>,
    %68 = vector.extract_strided_slice %5 {offsets = [0, 12], sizes = [8, 4], strides = [1, 1]} : vector<8x32xf32> to vector<8x4xf32>
    %69 = vector.extract_strided_slice %7 {offsets = [0, 12], sizes = [8, 4], strides = [1, 1]} : vector<8x64xf32> to vector<8x4xf32>
    %70 = vector.extract_strided_slice %7 {offsets = [0, 44], sizes = [8, 4], strides = [1, 1]} : vector<8x64xf32> to vector<8x4xf32>
    %cst_28 = arith.constant dense<0.000000e+00> : vector<8x8xf32>
    %71 = tpu.matmul %68, %69, %cst_28 {dimension_numbers = #tpu.dot_dimension_numbers<[1], [1], [0], [0], [0, 0, 1, 0], [], []>} : vector<8x4xf32>, vector<8x4xf32>, vector<8x8xf32> -> vector<8x8xf32>
    %cst_29 = arith.constant dense<0xFF800000> : vector<8xf32>
    %72 = vector.multi_reduction <maximumf>, %71, %cst_29 [1] : vector<8x8xf32> to vector<8xf32>
    %73 = vector.shape_cast %72 : vector<8xf32> to vector<8x1xf32>
    %74 = vector.broadcast %73 : vector<8x1xf32> to vector<8x8xf32>
    %75 = arith.subf %71, %74 : vector<8x8xf32>
    %76 = math.exp %75 : vector<8x8xf32>
    %cst_30 = arith.constant dense<0.000000e+00> : vector<8xf32>
    %77 = vector.multi_reduction <add>, %76, %cst_30 [1] : vector<8x8xf32> to vector<8xf32>
    %78 = vector.shape_cast %77 : vector<8xf32> to vector<8x1xf32>
    %79 = tpu.reciprocal %78 {approx = true} : vector<8x1xf32> -> vector<8x1xf32>
    %80 = arith.mulf %78, %79 : vector<8x1xf32>
    %cst_31 = arith.constant 2.000000e+00 : f32
    %81 = vector.broadcast %cst_31 : f32 to vector<8x1xf32>
    %82 = arith.subf %81, %80 : vector<8x1xf32>
    %83 = arith.mulf %79, %82 : vector<8x1xf32>
    %84 = vector.broadcast %83 : vector<8x1xf32> to vector<8x8xf32>
    %85 = arith.mulf %76, %84 : vector<8x8xf32>
    %cst_32 = arith.constant dense<0.000000e+00> : vector<8x4xf32>
    %86 = tpu.matmul %85, %70, %cst_32 {dimension_numbers = #tpu.dot_dimension_numbers<[1], [0], [0], [1], [0, 0, 1, 1], [], []>} : vector<8x8xf32>, vector<8x4xf32>, vector<8x4xf32> -> vector<8x4xf32>
    %c0_33 = arith.constant 0 : index
    %c12 = arith.constant 12 : index
    %87 = vector.load %arg8[%c0_33, %c12] : memref<8x32xf32, #tpu.memory_space<vmem>>, vector<8x4xf32>
    tpu.vector_store %arg8[%c0_33, %c12], %86 {strides = array<i32>} : memref<8x32xf32, #tpu.memory_space<vmem>>, vector<8x4xf32>,
    %88 = vector.extract_strided_slice %5 {offsets = [0, 16], sizes = [8, 4], strides = [1, 1]} : vector<8x32xf32> to vector<8x4xf32>
    %89 = vector.extract_strided_slice %7 {offsets = [0, 16], sizes = [8, 4], strides = [1, 1]} : vector<8x64xf32> to vector<8x4xf32>
    %90 = vector.extract_strided_slice %7 {offsets = [0, 48], sizes = [8, 4], strides = [1, 1]} : vector<8x64xf32> to vector<8x4xf32>
    %cst_34 = arith.constant dense<0.000000e+00> : vector<8x8xf32>
    %91 = tpu.matmul %88, %89, %cst_34 {dimension_numbers = #tpu.dot_dimension_numbers<[1], [1], [0], [0], [0, 0, 1, 0], [], []>} : vector<8x4xf32>, vector<8x4xf32>, vector<8x8xf32> -> vector<8x8xf32>
    %cst_35 = arith.constant dense<0xFF800000> : vector<8xf32>
    %92 = vector.multi_reduction <maximumf>, %91, %cst_35 [1] : vector<8x8xf32> to vector<8xf32>
    %93 = vector.shape_cast %92 : vector<8xf32> to vector<8x1xf32>
    %94 = vector.broadcast %93 : vector<8x1xf32> to vector<8x8xf32>
    %95 = arith.subf %91, %94 : vector<8x8xf32>
    %96 = math.exp %95 : vector<8x8xf32>
    %cst_36 = arith.constant dense<0.000000e+00> : vector<8xf32>
    %97 = vector.multi_reduction <add>, %96, %cst_36 [1] : vector<8x8xf32> to vector<8xf32>
    %98 = vector.shape_cast %97 : vector<8xf32> to vector<8x1xf32>
    %99 = tpu.reciprocal %98 {approx = true} : vector<8x1xf32> -> vector<8x1xf32>
    %100 = arith.mulf %98, %99 : vector<8x1xf32>
    %cst_37 = arith.constant 2.000000e+00 : f32
    %101 = vector.broadcast %cst_37 : f32 to vector<8x1xf32>
    %102 = arith.subf %101, %100 : vector<8x1xf32>
    %103 = arith.mulf %99, %102 : vector<8x1xf32>
    %104 = vector.broadcast %103 : vector<8x1xf32> to vector<8x8xf32>
    %105 = arith.mulf %96, %104 : vector<8x8xf32>
    %cst_38 = arith.constant dense<0.000000e+00> : vector<8x4xf32>
    %106 = tpu.matmul %105, %90, %cst_38 {dimension_numbers = #tpu.dot_dimension_numbers<[1], [0], [0], [1], [0, 0, 1, 1], [], []>} : vector<8x8xf32>, vector<8x4xf32>, vector<8x4xf32> -> vector<8x4xf32>
    %c0_39 = arith.constant 0 : index
    %c16 = arith.constant 16 : index
    %107 = vector.load %arg8[%c0_39, %c16] : memref<8x32xf32, #tpu.memory_space<vmem>>, vector<8x4xf32>
    tpu.vector_store %arg8[%c0_39, %c16], %106 {strides = array<i32>} : memref<8x32xf32, #tpu.memory_space<vmem>>, vector<8x4xf32>,
    %108 = vector.extract_strided_slice %5 {offsets = [0, 20], sizes = [8, 4], strides = [1, 1]} : vector<8x32xf32> to vector<8x4xf32>
    %109 = vector.extract_strided_slice %7 {offsets = [0, 20], sizes = [8, 4], strides = [1, 1]} : vector<8x64xf32> to vector<8x4xf32>
    %110 = vector.extract_strided_slice %7 {offsets = [0, 52], sizes = [8, 4], strides = [1, 1]} : vector<8x64xf32> to vector<8x4xf32>
    %cst_40 = arith.constant dense<0.000000e+00> : vector<8x8xf32>
    %111 = tpu.matmul %108, %109, %cst_40 {dimension_numbers = #tpu.dot_dimension_numbers<[1], [1], [0], [0], [0, 0, 1, 0], [], []>} : vector<8x4xf32>, vector<8x4xf32>, vector<8x8xf32> -> vector<8x8xf32>
    %cst_41 = arith.constant dense<0xFF800000> : vector<8xf32>
    %112 = vector.multi_reduction <maximumf>, %111, %cst_41 [1] : vector<8x8xf32> to vector<8xf32>
    %113 = vector.shape_cast %112 : vector<8xf32> to vector<8x1xf32>
    %114 = vector.broadcast %113 : vector<8x1xf32> to vector<8x8xf32>
    %115 = arith.subf %111, %114 : vector<8x8xf32>
    %116 = math.exp %115 : vector<8x8xf32>
    %cst_42 = arith.constant dense<0.000000e+00> : vector<8xf32>
    %117 = vector.multi_reduction <add>, %116, %cst_42 [1] : vector<8x8xf32> to vector<8xf32>
    %118 = vector.shape_cast %117 : vector<8xf32> to vector<8x1xf32>
    %119 = tpu.reciprocal %118 {approx = true} : vector<8x1xf32> -> vector<8x1xf32>
    %120 = arith.mulf %118, %119 : vector<8x1xf32>
    %cst_43 = arith.constant 2.000000e+00 : f32
    %121 = vector.broadcast %cst_43 : f32 to vector<8x1xf32>
    %122 = arith.subf %121, %120 : vector<8x1xf32>
    %123 = arith.mulf %119, %122 : vector<8x1xf32>
    %124 = vector.broadcast %123 : vector<8x1xf32> to vector<8x8xf32>
    %125 = arith.mulf %116, %124 : vector<8x8xf32>
    %cst_44 = arith.constant dense<0.000000e+00> : vector<8x4xf32>
    %126 = tpu.matmul %125, %110, %cst_44 {dimension_numbers = #tpu.dot_dimension_numbers<[1], [0], [0], [1], [0, 0, 1, 1], [], []>} : vector<8x8xf32>, vector<8x4xf32>, vector<8x4xf32> -> vector<8x4xf32>
    %c0_45 = arith.constant 0 : index
    %c20 = arith.constant 20 : index
    %127 = vector.load %arg8[%c0_45, %c20] : memref<8x32xf32, #tpu.memory_space<vmem>>, vector<8x4xf32>
    tpu.vector_store %arg8[%c0_45, %c20], %126 {strides = array<i32>} : memref<8x32xf32, #tpu.memory_space<vmem>>, vector<8x4xf32>,
    %128 = vector.extract_strided_slice %5 {offsets = [0, 24], sizes = [8, 4], strides = [1, 1]} : vector<8x32xf32> to vector<8x4xf32>
    %129 = vector.extract_strided_slice %7 {offsets = [0, 24], sizes = [8, 4], strides = [1, 1]} : vector<8x64xf32> to vector<8x4xf32>
    %130 = vector.extract_strided_slice %7 {offsets = [0, 56], sizes = [8, 4], strides = [1, 1]} : vector<8x64xf32> to vector<8x4xf32>
    %cst_46 = arith.constant dense<0.000000e+00> : vector<8x8xf32>
    %131 = tpu.matmul %128, %129, %cst_46 {dimension_numbers = #tpu.dot_dimension_numbers<[1], [1], [0], [0], [0, 0, 1, 0], [], []>} : vector<8x4xf32>, vector<8x4xf32>, vector<8x8xf32> -> vector<8x8xf32>
    %cst_47 = arith.constant dense<0xFF800000> : vector<8xf32>
    %132 = vector.multi_reduction <maximumf>, %131, %cst_47 [1] : vector<8x8xf32> to vector<8xf32>
    %133 = vector.shape_cast %132 : vector<8xf32> to vector<8x1xf32>
    %134 = vector.broadcast %133 : vector<8x1xf32> to vector<8x8xf32>
    %135 = arith.subf %131, %134 : vector<8x8xf32>
    %136 = math.exp %135 : vector<8x8xf32>
    %cst_48 = arith.constant dense<0.000000e+00> : vector<8xf32>
    %137 = vector.multi_reduction <add>, %136, %cst_48 [1] : vector<8x8xf32> to vector<8xf32>
    %138 = vector.shape_cast %137 : vector<8xf32> to vector<8x1xf32>
    %139 = tpu.reciprocal %138 {approx = true} : vector<8x1xf32> -> vector<8x1xf32>
    %140 = arith.mulf %138, %139 : vector<8x1xf32>
    %cst_49 = arith.constant 2.000000e+00 : f32
    %141 = vector.broadcast %cst_49 : f32 to vector<8x1xf32>
    %142 = arith.subf %141, %140 : vector<8x1xf32>
    %143 = arith.mulf %139, %142 : vector<8x1xf32>
    %144 = vector.broadcast %143 : vector<8x1xf32> to vector<8x8xf32>
    %145 = arith.mulf %136, %144 : vector<8x8xf32>
    %cst_50 = arith.constant dense<0.000000e+00> : vector<8x4xf32>
    %146 = tpu.matmul %145, %130, %cst_50 {dimension_numbers = #tpu.dot_dimension_numbers<[1], [0], [0], [1], [0, 0, 1, 1], [], []>} : vector<8x8xf32>, vector<8x4xf32>, vector<8x4xf32> -> vector<8x4xf32>
    %c0_51 = arith.constant 0 : index
    %c24 = arith.constant 24 : index
    %147 = vector.load %arg8[%c0_51, %c24] : memref<8x32xf32, #tpu.memory_space<vmem>>, vector<8x4xf32>
    tpu.vector_store %arg8[%c0_51, %c24], %146 {strides = array<i32>} : memref<8x32xf32, #tpu.memory_space<vmem>>, vector<8x4xf32>,
    %148 = vector.extract_strided_slice %5 {offsets = [0, 28], sizes = [8, 4], strides = [1, 1]} : vector<8x32xf32> to vector<8x4xf32>
    %149 = vector.extract_strided_slice %7 {offsets = [0, 28], sizes = [8, 4], strides = [1, 1]} : vector<8x64xf32> to vector<8x4xf32>
    %150 = vector.extract_strided_slice %7 {offsets = [0, 60], sizes = [8, 4], strides = [1, 1]} : vector<8x64xf32> to vector<8x4xf32>
    %cst_52 = arith.constant dense<0.000000e+00> : vector<8x8xf32>
    %151 = tpu.matmul %148, %149, %cst_52 {dimension_numbers = #tpu.dot_dimension_numbers<[1], [1], [0], [0], [0, 0, 1, 0], [], []>} : vector<8x4xf32>, vector<8x4xf32>, vector<8x8xf32> -> vector<8x8xf32>
    %cst_53 = arith.constant dense<0xFF800000> : vector<8xf32>
    %152 = vector.multi_reduction <maximumf>, %151, %cst_53 [1] : vector<8x8xf32> to vector<8xf32>
    %153 = vector.shape_cast %152 : vector<8xf32> to vector<8x1xf32>
    %154 = vector.broadcast %153 : vector<8x1xf32> to vector<8x8xf32>
    %155 = arith.subf %151, %154 : vector<8x8xf32>
    %156 = math.exp %155 : vector<8x8xf32>
    %cst_54 = arith.constant dense<0.000000e+00> : vector<8xf32>
    %157 = vector.multi_reduction <add>, %156, %cst_54 [1] : vector<8x8xf32> to vector<8xf32>
    %158 = vector.shape_cast %157 : vector<8xf32> to vector<8x1xf32>
    %159 = tpu.reciprocal %158 {approx = true} : vector<8x1xf32> -> vector<8x1xf32>
    %160 = arith.mulf %158, %159 : vector<8x1xf32>
    %cst_55 = arith.constant 2.000000e+00 : f32
    %161 = vector.broadcast %cst_55 : f32 to vector<8x1xf32>
    %162 = arith.subf %161, %160 : vector<8x1xf32>
    %163 = arith.mulf %159, %162 : vector<8x1xf32>
    %164 = vector.broadcast %163 : vector<8x1xf32> to vector<8x8xf32>
    %165 = arith.mulf %156, %164 : vector<8x8xf32>
    %cst_56 = arith.constant dense<0.000000e+00> : vector<8x4xf32>
    %166 = tpu.matmul %165, %150, %cst_56 {dimension_numbers = #tpu.dot_dimension_numbers<[1], [0], [0], [1], [0, 0, 1, 1], [], []>} : vector<8x8xf32>, vector<8x4xf32>, vector<8x4xf32> -> vector<8x4xf32>
    %c0_57 = arith.constant 0 : index
    %c28 = arith.constant 28 : index
    %167 = vector.load %arg8[%c0_57, %c28] : memref<8x32xf32, #tpu.memory_space<vmem>>, vector<8x4xf32>
    tpu.vector_store %arg8[%c0_57, %c28], %166 {strides = array<i32>} : memref<8x32xf32, #tpu.memory_space<vmem>>, vector<8x4xf32>,
    %c0_58 = arith.constant 0 : index
    %c0_59 = arith.constant 0 : index
    %168 = vector.load %arg8[%c0_58, %c0_59] : memref<8x32xf32, #tpu.memory_space<vmem>>, vector<8x32xf32>
    %c0_60 = arith.constant 0 : index
    %c0_61 = arith.constant 0 : index
    %169 = vector.load %arg5[%c0_60, %c0_61] : memref<32x32xf32, #tpu.memory_space<vmem>>, vector<32x32xf32>
    %cst_62 = arith.constant dense<0.000000e+00> : vector<8x32xf32>
    %170 = tpu.matmul %168, %169, %cst_62 {dimension_numbers = #tpu.dot_dimension_numbers<[1], [0], [0], [1], [0, 0, 1, 1], [], []>} : vector<8x32xf32>, vector<32x32xf32>, vector<8x32xf32> -> vector<8x32xf32>
    %c0_63 = arith.constant 0 : index
    %c0_64 = arith.constant 0 : index
    %171 = vector.load %arg6[%c0_63, %c0_64] : memref<1x32xf32, #tpu.memory_space<vmem>>, vector<1x32xf32>
    %172 = vector.broadcast %171 : vector<1x32xf32> to vector<8x32xf32>
    %173 = arith.addf %170, %172 : vector<8x32xf32>
    %c0_65 = arith.constant 0 : index
    %c0_66 = arith.constant 0 : index
    %c0_67 = arith.constant 0 : index
    %174 = vector.load %arg7[%c0_65, %c0_66, %c0_67] : memref<1x8x32xf32, #tpu.memory_space<vmem>>, vector<1x8x32xf32>
    %175 = vector.shape_cast %174 : vector<1x8x32xf32> to vector<8x32xf32>
    %176 = vector.shape_cast %173 : vector<8x32xf32> to vector<1x8x32xf32>
    tpu.vector_store %arg7[%c0_65, %c0_66, %c0_67], %176 {strides = array<i32>} : memref<1x8x32xf32, #tpu.memory_space<vmem>>, vector<1x8x32xf32>,
    return
  }
  func.func @transform_0(%arg0: i32, %arg1: i32) -> (i32, i32, i32) {
    %c0_i32 = arith.constant 0 : i32
    %c0_i32_0 = arith.constant 0 : i32
    return %arg0, %arg1, %c0_i32 : i32, i32, i32
  }
  func.func @transform_1(%arg0: i32, %arg1: i32) -> (i32, i32, i32) {
    %c0_i32 = arith.constant 0 : i32
    %c0_i32_0 = arith.constant 0 : i32
    %c0_i32_1 = arith.constant 0 : i32
    return %arg0, %c0_i32, %c0_i32_0 : i32, i32, i32
  }
  func.func @transform_2(%arg0: i32, %arg1: i32) -> (i32, i32) {
    %c0_i32 = arith.constant 0 : i32
    %c0_i32_0 = arith.constant 0 : i32
    %c0_i32_1 = arith.constant 0 : i32
    return %c0_i32, %c0_i32_0 : i32, i32
  }
  func.func @transform_3(%arg0: i32, %arg1: i32) -> (i32, i32) {
    %c0_i32 = arith.constant 0 : i32
    %c0_i32_0 = arith.constant 0 : i32
    %c0_i32_1 = arith.constant 0 : i32
    return %c0_i32, %c0_i32_0 : i32, i32
  }
  func.func @transform_4(%arg0: i32, %arg1: i32) -> (i32, i32) {
    %c0_i32 = arith.constant 0 : i32
    %c0_i32_0 = arith.constant 0 : i32
    %c0_i32_1 = arith.constant 0 : i32
    return %c0_i32, %c0_i32_0 : i32, i32
  }
  func.func @transform_5(%arg0: i32, %arg1: i32) -> (i32, i32, i32) {
    %c0_i32 = arith.constant 0 : i32
    %c0_i32_0 = arith.constant 0 : i32
    return %arg0, %arg1, %c0_i32 : i32, i32, i32
  }
}

</mosaic_0001>

<bundles_post_ra>
// kernel: tpu_custom_call.1
= control target key start
LH: loop header
LB: loop body
LE: loop exit
PB: predicated region body
PF: predicated region fallthrough
CT: control target
= control target key end

     0   :  { %s3221_s0 = inlined_call_operand.hbm [shape: f32[2,8,32], index: 0, kind: input, shape index: {}]   ;;  %s3222_s1 = inlined_call_operand.hbm [shape: f32[2,8,32], index: 1, kind: input, shape index: {}]   ;;  %s3223_s2 = inlined_call_operand.hbm [shape: f32[32,96], index: 2, kind: input, shape index: {}]   ;;  %s3224_s3 = inlined_call_operand.hbm [shape: f32[32,32], index: 3, kind: input, shape index: {}]   ;;  %s3225_s4 = inlined_call_operand.vmem [shape: f32[1,32], index: 4, kind: input, shape index: {}]   ;;  %s3226_s5 = inlined_call_operand.hbm [shape: f32[2,8,32], index: 5, kind: output, shape index: {}]  }
   0x1   :  { %3233 = sst [smem:[#allocation19_spill]] %s3223_s2 }
   0x2   :  { %3234 = sst [smem:[#allocation20_spill]] %s3224_s3 }
   0x3   :  { %10 = vsyncpa [#allocation4], 0 }
   0x4   :  { %12 = vsyncpa [#allocation4 + $0x1], 0 }
   0x5   :  { %13 = vsyncpa [#allocation7], 0 }
   0x6   :  { %15 = vsyncpa [#allocation7 + $0x1], 0 }
   0x7   :  { %16 = vsyncpa [#allocation10], 0 }
   0x8   :  { %17 = vsyncpa [#allocation5], 0 }
   0x9   :  { %19 = vsyncpa [#allocation5 + $0x1], 0  ;;  %s2759_s18 = smov 0   ;;  %s2761_s19 = smov 0  }
   0xa   :  { %s2763_s20 = smov 0   ;;  %s2765_s21 = smov 0  }
   0xb   :  { %s2767_s22 = smov 0   ;;  %s2769_s23 = smov 0  }
   0xc LB: > { %3235 = sst [smem:[#allocation17_spill]] %s2691_s22  ;;  %s2790_s24 = sadd.s32 4294967295, %s2695_s23   ;;  %s2695_s23 = sphi %s2769_s23, %s25_s23   ;;  %s2691_s22 = sphi %s2767_s22, %s3256_s22   ;;  %s2687_s21 = sphi %s2765_s21, %s3255_s21   ;;  %s2683_s20 = sphi %s2763_s20, %s3259_s20   ;;  %s2679_s19 = sphi %s2761_s19, %s3258_s19   ;;  %s2675_s18 = sphi %s2759_s18, %s3257_s18  }
   0xd   : > { %s2103_s25 = sadd.s32 4294967294, %s2695_s23   ;;  %p59_p0 = scmp.ne.s32.totalorder %s2679_s19, %s2675_s18 }
   0xe   : > { %p3227_p1 = scmp.eq.s32.totalorder %s2790_s24, 0  ;;  %p180_p3 = scmp.eq.s32.totalorder %s2103_s25, 1 }
   0xf   : > { %p2104_p5 = scmp.ge.s32.totalorder %s2695_s23, 1  ;;  %p187_p7 = scmp.lt.s32.totalorder %s2695_s23, 3 }
  0x10   : > { %p2799_p4 = por %p3227_p1, %p59_p0  ;;  %p2804_p6 = por %p180_p3, %p59_p0 }
  0x11   : > { %p2809_p8 = pnand %p2104_p5, %p187_p7  ;;  %s2697_s29 = smov [#allocation8]  }
  0x12   : > { %s3236_s26 = scalar_select %p2799_p4, 1, 0 }
  0x13   : > { %s3237_s27 = scalar_select %p2804_p6, 1, 0 }
  0x14   : > { %s3238_s28 = scalar_select %p2809_p8, 1, 0 }
  0x15   : > { %s199_s30 = sshll.u32 %s2697_s29, 4  ;;  %p2342_p9 = pneg %p2809_p8  ;;  %s2813_s30 = int_to_ptr.vmem [resolvable:$true] %s199_s30 }
  0x16   : > { %s2698_s7 = smov [#allocation9]   ;;  %s3240_s2 = sld [smem:[#allocation19_spill]] }
  0x17   : > { %p2820_p11 = pnand %p2342_p9, %p3227_p1  ;;  %s212_s8 = sshll.u32 %s2698_s7, 4  ;;  %s2824_s8 = int_to_ptr.vmem [resolvable:$true] %s212_s8 }
  0x19   : > { %p2487_p13 = pneg %p2820_p11 }
  0x1c   : > { %s2485_s11 = scalar_lea.hbm %s3240_s2, 512 }
  0x1d   : > { %p2486_p12 = scmp.ne.s32.totalorder %s3240_s2, %s2485_s11  ;;  %p2492_p5 = scmp.lt.u32.totalorder %s2485_s11, %s3240_s2 }
  0x1f   : > { %p2488_p0 = pnand %p2487_p13, %p2486_p12 }
  0x21   : > { %p2489_p3 = pneg %p2488_p0 }
  0x23   : > { %p2494_p7 = pnand %p2492_p5, %p2489_p3 }
  0x25   : > { %2497 = shalt.err (!%p2494_p7)
}
  0x26   : > { %s2498_s16 = scalar_lea.vmem %s2813_s30, 512  ;;  %p2506_p2 = scmp.lt.s32.totalorder %s2813_s30, %s2813_s30 }
  0x27   : > { %p2499_p9 = scmp.ne.s32.totalorder %s2813_s30, %s2498_s16  ;;  %p2507_p12 = scmp.lt.s32.totalorder %s2498_s16, %s2498_s16 }
  0x29   : > { %p2501_p10 = pnand %p2499_p9, %p2487_p13  ;;  %p2508_p0 = por %p2507_p12, %p2506_p2 }
  0x2b   : > { %p2502_p1 = pneg %p2501_p10 }
  0x2d   : > { %p2509_p6 = pnand %p2508_p0, %p2502_p1 }
  0x2f   : > { %2512 = shalt.err (!%p2509_p6)
}
  0x30   : > { %s2699_s17 = smov 128   ;;  %s2700_s25 = smov 8  }
  0x31   : > { %2345 = dma.hbm_to_vmem [thread:$0]  (!%p2820_p11), %s3240_s2, 512, %s2813_s30, [#allocation7], %s2699_s17, %s2699_s17, %s2700_s25  }
  0x32   : > { %s3241_s3 = sld [smem:[#allocation20_spill]] }
  0x38   : > { %s2513_s11 = scalar_lea.hbm %s3241_s3, 512 }
  0x39   : > { %p2514_p2 = scmp.ne.s32.totalorder %s3241_s3, %s2513_s11  ;;  %p2520_p10 = scmp.lt.u32.totalorder %s2513_s11, %s3241_s3 }
  0x3b   : > { %p2516_p1 = pnand %p2514_p2, %p2487_p13 }
  0x3d   : > { %p2517_p6 = pneg %p2516_p1 }
  0x3f   : > { %p2522_p3 = pnand %p2520_p10, %p2517_p6 }
  0x41   : > { %2525 = shalt.err (!%p2522_p3)
}
  0x42   : > { %s2526_s30 = scalar_lea.vmem %s2824_s8, 512  ;;  %p2534_p12 = scmp.lt.s32.totalorder %s2824_s8, %s2824_s8 }
  0x43   : > { %p2527_p5 = scmp.ne.s32.totalorder %s2824_s8, %s2526_s30  ;;  %p2535_p0 = scmp.lt.s32.totalorder %s2526_s30, %s2526_s30 }
  0x45   : > { %p2529_p7 = pnand %p2527_p5, %p2487_p13  ;;  %p2536_p2 = por %p2535_p0, %p2534_p12 }
  0x47   : > { %p2530_p9 = pneg %p2529_p7 }
  0x49   : > { %p2537_p1 = pnand %p2536_p2, %p2530_p9 }
  0x4b   : > { %2540 = shalt.err (!%p2537_p1)
}
  0x4c   : > { %2348 = dma.hbm_to_vmem [thread:$0]  (!%p2820_p11), %s3241_s3, 512, %s2824_s8, [#allocation10], %s2699_s17, %s2699_s17, %s2700_s25  }
  0x4d   : > { %s37_s7 = sadd.s32 1, %s2691_s22  ;;  %s46_s9 = sadd.s32 1, %s2683_s20 }
  0x4e   : > { %p39_p13 = scmp.ge.s32.totalorder %s37_s7, 2  ;;  %p53_p6 = scmp.ne.s32.totalorder %s2683_s20, %s2679_s19 }
  0x4f   : > { %p54_p10 = scmp.eq.s32.totalorder %s2695_s23, 0  ;;  %p2362_p3 = scmp.lt.s32.totalorder %s2695_s23, 2 }
  0x50   : > { %s3261_s7 = smov (%p39_p13, %s37_s7), 0  ;;  %p3243_p7 = scmp.eq.s32.totalorder %s2790_s24, 1 }
  0x51   : > { %3242 = sst [smem:[#allocation18_spill]] %s3261_s7  ;;  %p55_p5 = por %p54_p10, %p53_p6 }
  0x52   : > { %p2888_p9 = por %p3243_p7, %p53_p6  ;;  %s41_s10 = ssub.s32 %s2691_s22, %s3261_s7 }
  0x53   : > { %s229_s11 = sand.u32 1, %s2683_s20   ;;  %p44_p12 = scmp.eq.s32.totalorder %s41_s10, 0 }
  0x54   : > { %s3244_s6 = scalar_select %p2888_p9, 1, 0 }
  0x55   : > { %s2895_s8 = sshll.u32 %s229_s11, 3  ;;  %s2109_s17 = sshll.u32 %s2691_s22, 7 }
  0x56   : > { %s2899_s25 = scalar_select %p44_p12, %s2683_s20, %s46_s9  }
  0x57   : > { %s2904_s14 = scalar_lea.hbm %s3221_s0, %s2109_s17  ;;  %s233_s15 = scalar_lea.vmem [#allocation3], %s2895_s8 }
  0x58   : > { %s241_s30 = sshll.u32 %s233_s15, 4  ;;  %p2909_p11 = pnand %p2362_p3, %p55_p5  ;;  %s2913_s30 = int_to_ptr.vmem [resolvable:$true] %s241_s30 }
  0x59   : > { %s2918_s10 = scalar_lea.hbm %s3222_s1, %s2109_s17  ;;  %s230_s12 = scalar_lea.sflag [#allocation4], %s229_s11 }
  0x5a   : > { %s2541_s13 = scalar_lea.hbm %s2904_s14, 128  ;;  %p2543_p2 = pneg %p2909_p11 }
  0x5b   : > { %p2542_p0 = scmp.ne.s32.totalorder %s2904_s14, %s2541_s13  ;;  %s2546_s3 = scalar_lea.hbm %s3221_s0, 256 }
  0x5c   : > { %p2547_p6 = scmp.lt.u32.totalorder %s2904_s14, %s3221_s0  ;;  %p2548_p10 = scmp.lt.u32.totalorder %s2546_s3, %s2541_s13 }
  0x5d   : > { %p2544_p1 = pnand %p2543_p2, %p2542_p0  ;;  %p2550_p5 = scmp.lt.u32.totalorder %s2541_s13, %s2904_s14 }
  0x5e   : > { %p2549_p3 = por %p2548_p10, %p2547_p6 }
  0x5f   : > { %p2545_p13 = pneg %p2544_p1 }
  0x60   : > { %p2551_p7 = por %p2550_p5, %p2549_p3 }
  0x62   : > { %p2552_p12 = pnand %p2551_p7, %p2545_p13 }
  0x64   : > { %2555 = shalt.err (!%p2552_p12)
}
  0x65   : > { %s2556_s11 = scalar_lea.vmem %s2913_s30, 128  ;;  %s2701_s2 = smov [#allocation3]  }
  0x66   : > { %p2557_p0 = scmp.ne.s32.totalorder %s2913_s30, %s2556_s11  ;;  %s2561_s17 = sshll.u32 %s2701_s2, 4  ;;  %s2562_s17 = int_to_ptr.vmem [resolvable:$false] %s2561_s17 }
  0x67   : > { %s2563_s22 = scalar_lea.vmem %s2562_s17, 256  ;;  %p2564_p4 = scmp.lt.s32.totalorder %s2913_s30, %s2562_s17 }
  0x68   : > { %p2559_p1 = pnand %p2557_p0, %p2543_p2  ;;  %p2565_p6 = scmp.lt.s32.totalorder %s2563_s22, %s2556_s11 }
  0x6a   : > { %p2560_p9 = pneg %p2559_p1  ;;  %p2566_p10 = por %p2565_p6, %p2564_p4 }
  0x6c   : > { %p2567_p3 = pnand %p2566_p10, %p2560_p9 }
  0x6e   : > { %2570 = shalt.err (!%p2567_p3)
}
  0x6f   : > { %2352 = dma.hbm_to_vmem [thread:$0]  (!%p2909_p11), %s2904_s14, 128, %s2913_s30, %s230_s12  }
  0x70   : > { %s248_s3 = sand.u32 1, %s2695_s23   ;;  %s252_s7 = scalar_lea.vmem [#allocation6], %s2895_s8 }
  0x71   : > { %s259_s29 = sshll.u32 %s252_s7, 4  ;;  %s249_s9 = scalar_lea.sflag [#allocation7], %s248_s3  ;;  %s260_s29 = int_to_ptr.vmem [resolvable:$true] %s259_s29 }
  0x72   : > { %s2571_s13 = scalar_lea.hbm %s2918_s10, 128  ;;  %s2576_s2 = scalar_lea.hbm %s3222_s1, 256 }
  0x73   : > { %p2572_p4 = scmp.ne.s32.totalorder %s2918_s10, %s2571_s13  ;;  %p2577_p5 = scmp.lt.u32.totalorder %s2918_s10, %s3222_s1 }
  0x74   : > { %p2578_p7 = scmp.lt.u32.totalorder %s2576_s2, %s2571_s13  ;;  %p2580_p0 = scmp.lt.u32.totalorder %s2571_s13, %s2918_s10 }
  0x75   : > { %p2574_p9 = pnand %p2572_p4, %p2543_p2 }
  0x76   : > { %p2579_p12 = por %p2578_p7, %p2577_p5 }
  0x77   : > { %p2575_p13 = pneg %p2574_p9 }
  0x78   : > { %p2581_p1 = por %p2580_p0, %p2579_p12 }
  0x7a   : > { %p2582_p6 = pnand %p2581_p1, %p2575_p13 }
  0x7c   : > { %2585 = shalt.err (!%p2582_p6)
}
  0x7d   : > { %s2586_s8 = scalar_lea.vmem %s260_s29, 128  ;;  %s2702_s14 = smov [#allocation6]  }
  0x7e   : > { %p2587_p10 = scmp.ne.s32.totalorder %s260_s29, %s2586_s8  ;;  %s2591_s30 = sshll.u32 %s2702_s14, 4  ;;  %s2592_s30 = int_to_ptr.vmem [resolvable:$false] %s2591_s30 }
  0x7f   : > { %s2593_s12 = scalar_lea.vmem %s2592_s30, 256  ;;  %p2594_p9 = scmp.lt.s32.totalorder %s260_s29, %s2592_s30 }
  0x80   : > { %p2589_p3 = pnand %p2587_p10, %p2543_p2  ;;  %p2595_p8 = scmp.lt.s32.totalorder %s2593_s12, %s2586_s8 }
  0x82   : > { %p2590_p4 = pneg %p2589_p3  ;;  %p2596_p5 = por %p2595_p8, %p2594_p9 }
  0x84   : > { %p2597_p7 = pnand %p2596_p5, %p2590_p4 }
  0x86   : > { %2600 = shalt.err (!%p2597_p7)
}
  0x87   : > { %2355 = dma.hbm_to_vmem [thread:$0]  (!%p2909_p11), %s2918_s10, 128, %s260_s29, %s249_s9  }
  0x88   : > { %p3246_p13 = scmp.ne.s32.totalorder %s3238_s28, 0 }
  0x89   : > { %s2969_s3 = sand.u32 (!%p3246_p13), 1, %s2679_s19   ;;  %p3247_p8 = scmp.ne.s32.totalorder (!%p3246_p13), %s3236_s26, 0 }
  0x8a   : > { %268 = sbr.rel (%p3246_p13) target bundleno = 1782 (0x6f6), region = 40  ;;  %s2972_s7 = sshll.u32 (!%p3246_p13), %s2969_s3, 3 }
  0x8b   : > { %s271_s13 = scalar_lea.sflag (!%p3246_p13), [#allocation4], %s2969_s3  ;;  %s274_s15 = scalar_lea.vmem (!%p3246_p13), [#allocation3], %s2972_s7 }
  0x91   : > { %2654 = dma.done.wait (%p3247_p8), %s271_s13, 128  }
  0x92   : > { %2656 = vsyncadd (%p3247_p8), %s271_s13, 4294967168  ;;  %s279_s28 = sand.u32 1, %s2790_s24   ;;  %s283_s10 = scalar_lea.vmem [#allocation6], %s2972_s7 }
  0x93   : > { %s280_s16 = scalar_lea.sflag [#allocation7], %s279_s28 }
  0x94   : > { %2658 = dma.done.wait (%p3247_p8), %s280_s16, 128  }
  0x95   : > { %2660 = vsyncadd (%p3247_p8), %s280_s16, 4294967168  ;;  %p3248_p11 = scmp.eq.s32.totalorder %s2790_s24, 0 }
  0x97   : > { %2662 = dma.done.wait (%p3248_p11), [#allocation7], 512   ;;  %p3249_p2 = pmov %p3248_p11 }
  0x99   : > { %2664 = vsyncadd (%p3249_p2), [#allocation7], 4294966784  ;;  %p3250_p12 = pmov %p3249_p2 }
  0x9a   : > { %p3251_p0 = pmov %p3249_p2 }
  0x9b   : > { %2666 = dma.done.wait (%p3250_p12), [#allocation10], 512  }
  0x9c   : > { %2668 = vsyncadd (%p3251_p0), [#allocation10], 4294966784  ;;  %v2703_v0 = vmov 0.0|0.0   ;;  %vm2704_vm0 = vmmov 0   ;;  %v2705_v1 = vmov 0.0   ;;  %v325_v2 = vld [vmem:[#allocation8] sm:$0xff] }
  0x9d   : > { %2316 = vmatprep.subr.bf16.mxu1 %v2703_v0  ;;  %2310 = vmatprep.subr.bf16.mxu0 %v2703_v0  ;;  %v326_v3 = vld [vmem:[#allocation8 + $0x8] sm:$0xff]  ;;  %v327_v4 = vld [vmem:[#allocation8 + $0x10] sm:$0xff]  ;;  %v328_v6 = vld [vmem:[#allocation8 + $0x18] sm:$0xff]  ;;  %s2706_s24 = smov 96   ;;  %vm329_vm1 = vcmask 261120   ;;  %vm492_vm2 = vcmask 31744  }
  0x9e   : > { %2216 = vmatprep.mubr.msk.f32.mxu1 %vm2704_vm0, %v2705_v1  ;;  %2205 = vmatprep.mubr.msk.f32.mxu0 %vm2704_vm0, %v2705_v1  ;;  %v2443_v5 = vpack.i.bf16 %v326_v3, %v325_v2  ;;  %v2311_v7 = vpack.c.bf16 %v326_v3, %v325_v2  ;;  %v2448_v8 = vpack.i.bf16 %v328_v6, %v327_v4  ;;  %v323_v10 = vld [vmem:[%s274_s15] sm:$0xff]  ;;  %v324_v19 = vld [vmem:[%s283_s10] sm:$0xff]  ;;  %s2707_s26 = smov 120   ;;  %s2708_s29 = smov 124   ;;  %vm569_vm3 = vcmask 64512  }
  0x9f   : > { %v2314_v9 = vpack.c.bf16 %v328_v6, %v327_v4  ;;  %s2709_s9 = smov 116   ;;  %s2710_s11 = smov 112   ;;  %vm833_vm4 = vcmask 64544   ;;  %vm1007_vm5 = vcmask 97344   ;;  %vm1181_vm6 = vcmask 130144  }
  0xa0   : > { %2444 = vrot.lane.b32.xlu0 %v2443_v5, %s2706_s24  ;;  %2312 = vmatpush3.bf16.msra.mxu0 %v2311_v7  ;;  %s2711_s2 = smov 108   ;;  %s2712_s17 = smov 104   ;;  %vm1355_vm7 = vcmask 162944   ;;  %vm1529_vm8 = vcmask 195744   ;;  %vm1703_vm9 = vcmask 228544   ;;  %vm1877_vm10 = vcmask 261344  }
  0xa1   : > { %2313 = vmatprep.subr.bf16.mxu0 %v2703_v0  ;;  %s2713_s22 = smov 100   ;;  %s2714_s8 = smov 88  }
  0xa2   : > { %s2715_s14 = smov 84   ;;  %s2716_s30 = smov 92  }
  0xa3   : > { %s2717_s12 = smov 76   ;;  %s2718_s13 = smov 80  }
  0xa4   : > { %2449 = vrot.lane.b32.xlu0 %v2448_v8, %s2706_s24  ;;  %2315 = vmatpush3.bf16.msra.mxu0 %v2314_v9  ;;  %s2719_s15 = smov 68   ;;  %s2720_s28 = smov 72  }
  0xa5   : > { %2229 = vmatprep.subr.mxu0 %v2705_v1  ;;  %s2721_s16 = smov 4   ;;  %s2722_s10 = smov 8  }
  0xa6   : > { %p3252_p6 = scmp.ne.s32.totalorder %s3244_s6, 0 }
  0xa7   : > { %2206 = vmatmul.mubr.msk.f32.vlgmr.msra.gmra.mrb[0].mxu0 %vm329_vm1, %v323_v10 }
  0xa8   : > { %2231 = vmatprep.mubr.msk.f32.mxu0 %vm2704_vm0, %v2705_v1 }
 0x112   : > { %v2445_v11 = vpop.permute.xlu0 %2444 }
 0x113   : > { %v2447_v12 = vunpack.i.h.bf16 %v2445_v11  ;;  %v2446_v13 = vunpack.i.l.bf16 %v2445_v11 }
 0x115   : > { %v2317_v14 = vpack.c.bf16 %v2447_v12, %v2446_v13 }
 0x116   : > { %v2450_v15 = vpop.permute.xlu0 %2449 }
 0x117   : > { %v2452_v16 = vunpack.i.h.bf16 %v2450_v15  ;;  %v2451_v17 = vunpack.i.l.bf16 %v2450_v15  ;;  %2318 = vmatpush3.bf16.msra.mxu1 %v2317_v14 }
 0x118   : > { %2319 = vmatprep.subr.bf16.mxu1 %v2703_v0 }
 0x119   : > { %v2320_v18 = vpack.c.bf16 %v2452_v16, %v2451_v17 }
 0x11b   : > { %2321 = vmatpush3.bf16.msra.mxu1 %v2320_v18 }
 0x11c   : > { %2219 = vmatprep.subr.mxu1 %v2705_v1 }
 0x11e   : > { %2217 = vmatmul.mubr.msk.f32.vlgmr.msra.gmra.mrb[0].mxu1 %vm329_vm1, %v324_v19 }
 0x11f   : > { %2221 = vmatprep.mubr.msk.f32.mxu1 %vm2704_vm0, %v2705_v1 }
 0x17a   : > { %v399_v20 = vpop.f32.mrb[0].mxu0 }
 0x17b   : > { %v2207_v21 = vpop.f32.mrb[1].mxu0 }
 0x1f1   : > { %v3016_v22 = vpop.f32.mrb[0].mxu1 }
 0x1f2   : > { %837 = vrot.lane.b32.xlu0 %v3016_v22, %s2707_s26  ;;  %663 = vrot.lane.b32.xlu1 %v3016_v22, %s2708_s29  ;;  %v2218_v23 = vpop.f32.mrb[1].mxu1 }
 0x1f3   : > { %2220 = vmatpush3.xpose.msk.msra.mxu1 %vm492_vm2, %v3016_v22 }
 0x1f4   : > { %2224 = vmatprep.subr.mxu1 %v2705_v1 }
 0x1f6   : > { %2222 = vmatmul.mubr.msk.f32.vlgmr.msra.gmra.mrb[2].mxu1 %vm492_vm2, %v399_v20  ;;  %1011 = vrot.lane.b32.xlu0 %v3016_v22, %s2709_s9 }
 0x1f7   : > { %661 = vrot.lane.b32.xlu1 %v399_v20, %s2708_s29  ;;  %2226 = vmatprep.mubr.msk.f32.mxu1 %vm2704_vm0, %v2705_v1  ;;  %s2725_s29 = smov 20  }
 0x1fa   : > { %1185 = vrot.lane.b32.xlu0 %v3016_v22, %s2710_s11 }
 0x1fb   : > { %835 = vrot.lane.b32.xlu1 %v399_v20, %s2707_s26  ;;  %s2724_s26 = smov 16  }
 0x1fe   : > { %1359 = vrot.lane.b32.xlu0 %v3016_v22, %s2711_s2 }
 0x1ff   : > { %1009 = vrot.lane.b32.xlu1 %v399_v20, %s2709_s9  ;;  %s2726_s9 = smov 24  }
 0x202   : > { %1533 = vrot.lane.b32.xlu0 %v3016_v22, %s2712_s17 }
 0x203   : > { %1183 = vrot.lane.b32.xlu1 %v399_v20, %s2710_s11  ;;  %s2727_s11 = smov 28  }
 0x206   : > { %1707 = vrot.lane.b32.xlu0 %v3016_v22, %s2713_s22 }
 0x207   : > { %1357 = vrot.lane.b32.xlu1 %v399_v20, %s2711_s2 }
 0x20b   : > { %1531 = vrot.lane.b32.xlu1 %v399_v20, %s2712_s17 }
 0x20f   : > { %1705 = vrot.lane.b32.xlu1 %v399_v20, %s2713_s22  ;;  %s2147_s22 = sshll.u32 %s2687_s21, 7  ;;  %s2728_s21 = smov [#allocation11]  }
 0x213   : > { %584 = vrot.lane.b32.xlu1 %v3016_v22, %s2706_s24  ;;  %s2723_s24 = smov 12  }
 0x264   : > { %v838_v24 = vpop.permute.xlu0 %837  ;;  %v664_v25 = vpop.permute.xlu1 %663 }
 0x265   : > { %2230 = vmatpush3.xpose.msk.msra.mxu0 %vm492_vm2, %v664_v25 }
 0x266   : > { %2239 = vmatprep.subr.mxu0 %v2705_v1 }
 0x268   : > { %v1012_v26 = vpop.permute.xlu0 %1011 }
 0x269   : > { %v662_v27 = vpop.permute.xlu1 %661 }
 0x26a   : > { %2232 = vmatmul.mubr.msk.f32.vlgmr.msra.gmra.mrb[2].mxu0 %vm492_vm2, %v662_v27 }
 0x26b   : > { %2240 = vmatpush3.xpose.msk.msra.mxu0 %vm492_vm2, %v838_v24  ;;  %2241 = vmatprep.mubr.msk.f32.mxu0 %vm2704_vm0, %v2705_v1 }
 0x26c   : > { %v1186_v28 = vpop.permute.xlu0 %1185  ;;  %2249 = vmatprep.subr.mxu0 %v2705_v1 }
 0x26d   : > { %v836_v29 = vpop.permute.xlu1 %835 }
 0x26e   : > { %2242 = vmatmul.mubr.msk.f32.vlgmr.msra.gmra.mrb[4].mxu0 %vm492_vm2, %v836_v29 }
 0x26f   : > { %2250 = vmatpush3.xpose.msk.msra.mxu0 %vm492_vm2, %v1012_v26  ;;  %2251 = vmatprep.mubr.msk.f32.mxu0 %vm2704_vm0, %v2705_v1 }
 0x270   : > { %2259 = vmatprep.subr.mxu0 %v2705_v1  ;;  %v1360_v31 = vpop.permute.xlu0 %1359 }
 0x271   : > { %v1010_v30 = vpop.permute.xlu1 %1009 }
 0x272   : > { %2252 = vmatmul.mubr.msk.f32.vlgmr.msra.gmra.mrb[6].mxu0 %vm492_vm2, %v1010_v30 }
 0x273   : > { %2260 = vmatpush3.xpose.msk.msra.mxu0 %vm492_vm2, %v1186_v28  ;;  %2261 = vmatprep.mubr.msk.f32.mxu0 %vm2704_vm0, %v2705_v1 }
 0x274   : > { %2269 = vmatprep.subr.mxu0 %v2705_v1  ;;  %v1534_v33 = vpop.permute.xlu0 %1533 }
 0x275   : > { %v1184_v32 = vpop.permute.xlu1 %1183 }
 0x276   : > { %2262 = vmatmul.mubr.msk.f32.vlgmr.msra.gmra.mrb[8].mxu0 %vm492_vm2, %v1184_v32 }
 0x277   : > { %2270 = vmatpush3.xpose.msk.msra.mxu0 %vm492_vm2, %v1360_v31  ;;  %2271 = vmatprep.mubr.msk.f32.mxu0 %vm2704_vm0, %v2705_v1 }
 0x278   : > { %2279 = vmatprep.subr.mxu0 %v2705_v1  ;;  %v1708_v36 = vpop.permute.xlu0 %1707 }
 0x279   : > { %v1358_v34 = vpop.permute.xlu1 %1357 }
 0x27a   : > { %2272 = vmatmul.mubr.msk.f32.vlgmr.msra.gmra.mrb[10].mxu0 %vm492_vm2, %v1358_v34 }
 0x27b   : > { %2280 = vmatpush3.xpose.msk.msra.mxu0 %vm492_vm2, %v1534_v33  ;;  %2281 = vmatprep.mubr.msk.f32.mxu0 %vm2704_vm0, %v2705_v1 }
 0x27c   : > { %2289 = vmatprep.subr.mxu0 %v2705_v1 }
 0x27d   : > { %v1532_v35 = vpop.permute.xlu1 %1531 }
 0x27e   : > { %2282 = vmatmul.mubr.msk.f32.vlgmr.msra.gmra.mrb[12].mxu0 %vm492_vm2, %v1532_v35 }
 0x27f   : > { %2290 = vmatpush3.xpose.msk.msra.mxu0 %vm492_vm2, %v1708_v36  ;;  %2291 = vmatprep.mubr.msk.f32.mxu0 %vm2704_vm0, %v2705_v1 }
 0x280   : > { %2322 = vmatprep.subr.bf16.mxu0 %v2703_v0 }
 0x281   : > { %v1706_v37 = vpop.permute.xlu1 %1705 }
 0x282   : > { %2292 = vmatmul.mubr.msk.f32.vlgmr.msra.gmra.mrb[14].mxu0 %vm492_vm2, %v1706_v37 }
 0x283   : > { %2307 = vmatprep.mubr.msk.f32.mxu0 %vm2704_vm0, %v2705_v1 }
 0x285   : > { %v585_v38 = vpop.permute.xlu1 %584 }
 0x286   : > { %2225 = vmatpush3.msra.mxu1 %v585_v38 }
 0x287   : > { %2234 = vmatprep.subr.mxu1 %v2705_v1 }
 0x2c9   : > { %v565_v39 = vpop.f32.mrb[2].mxu1 }
 0x2ca   : > { %v2223_v40 = vpop.f32.mrb[3].mxu1  ;;  %v570_v41 = vsel %vm569_vm3, %v565_v39, -inf }
 0x2cb   : > { %571 = vmax.xlane.f32.xlu0 %v570_v41 }
 0x33d   : > { %v735_v42 = vpop.f32.mrb[2].mxu0 }
 0x33e   : > { %v2233_v43 = vpop.f32.mrb[3].mxu0  ;;  %v739_v44 = vsel %vm569_vm3, %v735_v42, -inf }
 0x33f   : > { %740 = vmax.xlane.f32.xlu1 %v739_v44 }
 0x341   : > { %v909_v45 = vpop.f32.mrb[4].mxu0 }
 0x342   : > { %v2243_v46 = vpop.f32.mrb[5].mxu0  ;;  %v913_v47 = vsel %vm569_vm3, %v909_v45, -inf }
 0x343   : > { %914 = vmax.xlane.f32.xlu0 %v913_v47 }
 0x345   : > { %v1083_v48 = vpop.f32.mrb[6].mxu0 }
 0x346   : > { %v2253_v49 = vpop.f32.mrb[7].mxu0  ;;  %v1087_v50 = vsel %vm569_vm3, %v1083_v48, -inf }
 0x347   : > { %1088 = vmax.xlane.f32.xlu0 %v1087_v50 }
 0x349   : > { %v1257_v51 = vpop.f32.mrb[8].mxu0 }
 0x34a   : > { %v2263_v52 = vpop.f32.mrb[9].mxu0  ;;  %v1261_v53 = vsel %vm569_vm3, %v1257_v51, -inf }
 0x34b   : > { %1262 = vmax.xlane.f32.xlu1 %v1261_v53 }
 0x34d   : > { %v1431_v54 = vpop.f32.mrb[10].mxu0 }
 0x34e   : > { %v2273_v55 = vpop.f32.mrb[11].mxu0  ;;  %v1435_v56 = vsel %vm569_vm3, %v1431_v54, -inf }
 0x34f   : > { %1436 = vmax.xlane.f32.xlu0 %v1435_v56 }
 0x351   : > { %v3075_v57 = vpop.f32.mrb[12].mxu0 }
 0x352   : > { %v2283_v58 = vpop.f32.mrb[13].mxu0  ;;  %v1609_v59 = vsel %vm569_vm3, %v3075_v57, -inf }
 0x353   : > { %1610 = vmax.xlane.f32.xlu1 %v1609_v59 }
 0x355   : > { %v3079_v60 = vpop.f32.mrb[14].mxu0 }
 0x356   : > { %v2293_v61 = vpop.f32.mrb[15].mxu0  ;;  %v1783_v62 = vsel %vm569_vm3, %v3079_v60, -inf }
 0x357   : > { %1784 = vmax.xlane.f32.xlu0 %v1783_v62 }
 0x358   : > { %v572_v63 = vpop.xlane.xlu0 %571 }
 0x359   : > { %v573_v2 = vsub.f32 %v565_v39, %v572_v63 }
 0x35b   : > { %v574_v3 = vmul.f32 1.442695, %v573_v2 }
 0x35d   : > { %2453 = vpow2.f32 %v574_v3 }
 0x364   : > { %927 = vrot.lane.b32.xlu1 %v3016_v22, %s2714_s8  ;;  %s322_s8 = scalar_lea.vmem [#allocation11], %s2972_s7  ;;  %s2605_s7 = sshll.u32 %s2728_s21, 4  ;;  %s2606_s7 = int_to_ptr.vmem [resolvable:$false] %s2605_s7 }
 0x367   : > { %v3086_v4 = vpop.eup %2453 }
 0x368   : > { %1101 = vrot.lane.b32.xlu1 %v3016_v22, %s2715_s14  ;;  %v576_v5 = vsel %vm569_vm3, %v3086_v4, 0.0  ;;  %s1980_s14 = sshll.u32 %s322_s8, 4  ;;  %s3173_s14 = int_to_ptr.vmem [resolvable:$true] %s1980_s14 }
 0x369   : > { %p2608_p4 = scmp.lt.s32.totalorder %s3173_s14, %s2606_s7 }
 0x36d   : > { %753 = vrot.lane.b32.xlu0 %v3016_v22, %s2716_s30 }
 0x38c   : > { %577 = vadd.xlane.f32.xlu1 %v576_v5 }
 0x3cc   : > { %v741_v6 = vpop.xlane.xlu1 %740 }
 0x3cd   : > { %v742_v7 = vsub.f32 %v735_v42, %v741_v6 }
 0x3cf   : > { %v743_v8 = vmul.f32 1.442695, %v742_v7 }
 0x3d0   : > { %v915_v9 = vpop.xlane.xlu0 %914 }
 0x3d1   : > { %2455 = vpow2.f32 %v743_v8  ;;  %v916_v10 = vsub.f32 %v909_v45, %v915_v9 }
 0x3d3   : > { %v917_v11 = vmul.f32 1.442695, %v916_v10 }
 0x3d4   : > { %v1089_v12 = vpop.xlane.xlu0 %1088 }
 0x3d5   : > { %2457 = vpow2.f32 %v917_v11  ;;  %v1090_v13 = vsub.f32 %v1083_v48, %v1089_v12 }
 0x3d7   : > { %v1091_v14 = vmul.f32 1.442695, %v1090_v13 }
 0x3d8   : > { %v1263_v15 = vpop.xlane.xlu1 %1262 }
 0x3d9   : > { %2459 = vpow2.f32 %v1091_v14  ;;  %v1264_v16 = vsub.f32 %v1257_v51, %v1263_v15 }
 0x3db   : > { %v3090_v17 = vpop.eup %2455  ;;  %v1265_v18 = vmul.f32 1.442695, %v1264_v16 }
 0x3dc   : > { %v1437_v19 = vpop.xlane.xlu0 %1436  ;;  %v745_v20 = vsel %vm569_vm3, %v3090_v17, 0.0 }
 0x3dd   : > { %2461 = vpow2.f32 %v1265_v18  ;;  %v1438_v21 = vsub.f32 %v1431_v54, %v1437_v19  ;;  %746 = vadd.xlane.f32.xlu0 %v745_v20 }
 0x3df   : > { %v3094_v23 = vpop.eup %2457  ;;  %v1439_v24 = vmul.f32 1.442695, %v1438_v21 }
 0x3e0   : > { %v919_v25 = vsel %vm569_vm3, %v3094_v23, 0.0  ;;  %v1611_v32 = vpop.xlane.xlu1 %1610 }
 0x3e1   : > { %2463 = vpow2.f32 %v1439_v24  ;;  %920 = vadd.xlane.f32.xlu1 %v919_v25  ;;  %v1612_v33 = vsub.f32 %v3075_v57, %v1611_v32 }
 0x3e3   : > { %v3098_v26 = vpop.eup %2459  ;;  %v1613_v35 = vmul.f32 1.442695, %v1612_v33 }
 0x3e4   : > { %v1093_v27 = vsel %vm569_vm3, %v3098_v26, 0.0  ;;  %v1785_v34 = vpop.xlane.xlu0 %1784  ;;  %v928_v37 = vpop.permute.xlu1 %927 }
 0x3e5   : > { %1094 = vadd.xlane.f32.xlu0 %v1093_v27  ;;  %v1786_v36 = vsub.f32 %v3079_v60, %v1785_v34  ;;  %2465 = vpow2.f32 %v1613_v35 }
 0x3e7   : > { %v3102_v28 = vpop.eup %2461  ;;  %v1787_v38 = vmul.f32 1.442695, %v1786_v36 }
 0x3e8   : > { %v1267_v29 = vsel %vm569_vm3, %v3102_v28, 0.0  ;;  %v1102_v39 = vpop.permute.xlu1 %1101  ;;  %v754_v50 = vpop.permute.xlu0 %753 }
 0x3e9   : > { %1268 = vadd.xlane.f32.xlu1 %v1267_v29  ;;  %2467 = vpow2.f32 %v1787_v38 }
 0x3eb   : > { %v3106_v30 = vpop.eup %2463 }
 0x3ec   : > { %v1441_v31 = vsel %vm569_vm3, %v3106_v30, 0.0 }
 0x3ed   : > { %1442 = vadd.xlane.f32.xlu0 %v1441_v31 }
 0x3ef   : > { %v3114_v41 = vpop.eup %2465 }
 0x3f0   : > { %v1615_v42 = vsel %vm569_vm3, %v3114_v41, 0.0 }
 0x3f3   : > { %v3118_v43 = vpop.eup %2467 }
 0x3f4   : > { %v1789_v44 = vsel %vm569_vm3, %v3118_v43, 0.0 }
 0x3fa   : > { %1449 = vrot.lane.b32.xlu1 %v3016_v22, %s2717_s12 }
 0x403   : > { %1275 = vrot.lane.b32.xlu0 %v3016_v22, %s2718_s13  ;;  %s3171_s13 = scalar_lea.hbm %s3226_s5, %s2147_s22 }
 0x419   : > { %v578_v40 = vpop.xlane.xlu1 %577 }
 0x41a   : > { %2469 = vrcp.f32 %v578_v40 }
 0x41e   : > { %1616 = vadd.xlane.f32.xlu1 %v1615_v42 }
 0x422   : > { %1790 = vadd.xlane.f32.xlu0 %v1789_v44 }
 0x424   : > { %v2470_v45 = vpop.eup %2469 }
 0x425   : > { %v580_v46 = vmul.f32 %v2470_v45, %v578_v40 }
 0x427   : > { %v581_v47 = vsub.f32 2.0, %v580_v46  ;;  %v1880_v46 = vld [vmem:[#allocation9] sm:$0xff] }
 0x429   : > { %v582_v48 = vmul.f32 %v2470_v45, %v581_v47  ;;  %v1881_v47 = vld [vmem:[#allocation9 + $0x8] sm:$0xff] }
 0x42b   : > { %v583_v49 = vmul.f32 %v3086_v4, %v582_v48  ;;  %v2323_v48 = vpack.c.bf16 %v1881_v47, %v1880_v46 }
 0x42d   : > { %2227 = vmatmul.mubr.msk.f32.vlgmr.msra.gmra.mrb[4].mxu1 %vm569_vm3, %v583_v49  ;;  %v1882_v49 = vld [vmem:[#allocation9 + $0x10] sm:$0xff]  ;;  %2324 = vmatpush3.bf16.msra.mxu0 %v2323_v48 }
 0x42e   : > { %2235 = vmatpush3.msra.mxu1 %v754_v50  ;;  %2236 = vmatprep.mubr.msk.f32.mxu1 %vm2704_vm0, %v2705_v1  ;;  %v1883_v50 = vld [vmem:[#allocation9 + $0x18] sm:$0xff] }
 0x42f   : > { %1797 = vrot.lane.b32.xlu1 %v3016_v22, %s2719_s15  ;;  %2244 = vmatprep.subr.mxu1 %v2705_v1  ;;  %s1966_s15 = scalar_lea.sflag [#allocation5], %s2969_s3 }
 0x430   : > { %2325 = vmatprep.subr.bf16.mxu0 %v2703_v0 }
 0x438   : > { %1623 = vrot.lane.b32.xlu0 %v3016_v22, %s2720_s28  ;;  %s2601_s28 = scalar_lea.vmem %s3173_s14, 128 }
 0x439   : > { %p2602_p1 = scmp.ne.s32.totalorder %s3173_s14, %s2601_s28 }
 0x43b   : > { %p2603_p10 = pnand %p2602_p1, %p3252_p6 }
 0x43d   : > { %p2604_p3 = pneg %p2603_p10 }
 0x46a   : > { %v747_v51 = vpop.xlane.xlu0 %746 }
 0x46b   : > { %2471 = vrcp.f32 %v747_v51 }
 0x46e   : > { %v921_v52 = vpop.xlane.xlu1 %920 }
 0x46f   : > { %2473 = vrcp.f32 %v921_v52 }
 0x472   : > { %v1095_v53 = vpop.xlane.xlu0 %1094 }
 0x473   : > { %2475 = vrcp.f32 %v1095_v53 }
 0x475   : > { %v2472_v54 = vpop.eup %2471 }
 0x476   : > { %v749_v55 = vmul.f32 %v2472_v54, %v747_v51  ;;  %v1269_v56 = vpop.xlane.xlu1 %1268  ;;  %v2326_v51 = vpack.c.bf16 %v1883_v50, %v1882_v49 }
 0x477   : > { %2477 = vrcp.f32 %v1269_v56 }
 0x478   : > { %v750_v57 = vsub.f32 2.0, %v749_v55  ;;  %2327 = vmatpush3.bf16.msra.mxu0 %v2326_v51 }
 0x479   : > { %v2474_v58 = vpop.eup %2473 }
 0x47a   : > { %v751_v59 = vmul.f32 %v2472_v54, %v750_v57  ;;  %v923_v60 = vmul.f32 %v2474_v58, %v921_v52  ;;  %v1443_v61 = vpop.xlane.xlu0 %1442 }
 0x47b   : > { %2479 = vrcp.f32 %v1443_v61 }
 0x47c   : > { %v752_v62 = vmul.f32 %v3090_v17, %v751_v59  ;;  %v924_v63 = vsub.f32 2.0, %v923_v60  ;;  %v1450_v17 = vpop.permute.xlu1 %1449 }
 0x47d   : > { %v2476_v22 = vpop.eup %2475 }
 0x47e   : > { %v925_v2 = vmul.f32 %v2474_v58, %v924_v63  ;;  %v1097_v3 = vmul.f32 %v2476_v22, %v1095_v53  ;;  %2237 = vmatmul.mubr.msk.f32.vlgmr.msra.gmra.mrb[6].mxu1 %vm569_vm3, %v752_v62  ;;  %v1276_v14 = vpop.permute.xlu0 %1275  ;;  %v2144_v63 = vld [vmem:[%s3225_s4] ss:$0 sm:$0xff] }
 0x47f   : > { %2245 = vmatpush3.msra.mxu1 %v928_v37  ;;  %2246 = vmatprep.mubr.msk.f32.mxu1 %vm2704_vm0, %v2705_v1 }
 0x480   : > { %v926_v4 = vmul.f32 %v3094_v23, %v925_v2  ;;  %v1098_v5 = vsub.f32 2.0, %v1097_v3  ;;  %2254 = vmatprep.subr.mxu1 %v2705_v1 }
 0x481   : > { %v2478_v6 = vpop.eup %2477 }
 0x482   : > { %v1099_v7 = vmul.f32 %v2476_v22, %v1098_v5  ;;  %v1271_v8 = vmul.f32 %v2478_v6, %v1269_v56  ;;  %2247 = vmatmul.mubr.msk.f32.vlgmr.msra.gmra.mrb[8].mxu1 %vm569_vm3, %v926_v4 }
 0x483   : > { %2255 = vmatpush3.msra.mxu1 %v1102_v39  ;;  %2256 = vmatprep.mubr.msk.f32.mxu1 %vm2704_vm0, %v2705_v1 }
 0x484   : > { %v1100_v9 = vmul.f32 %v3098_v26, %v1099_v7  ;;  %v1272_v10 = vsub.f32 2.0, %v1271_v8  ;;  %2264 = vmatprep.subr.mxu1 %v2705_v1 }
 0x485   : > { %v2480_v11 = vpop.eup %2479 }
 0x486   : > { %v1273_v12 = vmul.f32 %v2478_v6, %v1272_v10  ;;  %v1445_v13 = vmul.f32 %v2480_v11, %v1443_v61  ;;  %2257 = vmatmul.mubr.msk.f32.vlgmr.msra.gmra.mrb[10].mxu1 %vm569_vm3, %v1100_v9 }
 0x487   : > { %2265 = vmatpush3.msra.mxu1 %v1276_v14  ;;  %2266 = vmatprep.mubr.msk.f32.mxu1 %vm2704_vm0, %v2705_v1 }
 0x488   : > { %v1274_v15 = vmul.f32 %v3102_v28, %v1273_v12  ;;  %v1446_v16 = vsub.f32 2.0, %v1445_v13  ;;  %2274 = vmatprep.subr.mxu1 %v2705_v1 }
 0x48a   : > { %v1447_v18 = vmul.f32 %v2480_v11, %v1446_v16  ;;  %2267 = vmatmul.mubr.msk.f32.vlgmr.msra.gmra.mrb[12].mxu1 %vm569_vm3, %v1274_v15 }
 0x48b   : > { %2275 = vmatpush3.msra.mxu1 %v1450_v17  ;;  %2276 = vmatprep.mubr.msk.f32.mxu1 %vm2704_vm0, %v2705_v1 }
 0x48c   : > { %v1448_v19 = vmul.f32 %v3106_v30, %v1447_v18  ;;  %2284 = vmatprep.subr.mxu1 %v2705_v1 }
 0x48e   : > { %2277 = vmatmul.mubr.msk.f32.vlgmr.msra.gmra.mrb[14].mxu1 %vm569_vm3, %v1448_v19 }
 0x48f   : > { %2286 = vmatprep.mubr.msk.f32.mxu1 %vm2704_vm0, %v2705_v1 }
 0x4ab   : > { %v1617_v20 = vpop.xlane.xlu1 %1616 }
 0x4ac   : > { %2481 = vrcp.f32 %v1617_v20 }
 0x4af   : > { %v1791_v21 = vpop.xlane.xlu0 %1790  ;;  %v1798_v32 = vpop.permute.xlu1 %1797 }
 0x4b0   : > { %2483 = vrcp.f32 %v1791_v21 }
 0x4b3   : > { %v1624_v23 = vpop.permute.xlu0 %1623 }
 0x4b4   : > { %2285 = vmatpush3.msra.mxu1 %v1624_v23 }
 0x4b5   : > { %2294 = vmatprep.subr.mxu1 %v2705_v1 }
 0x4b6   : > { %v2482_v24 = vpop.eup %2481 }
 0x4b7   : > { %v1619_v25 = vmul.f32 %v2482_v24, %v1617_v20 }
 0x4b9   : > { %v1620_v26 = vsub.f32 2.0, %v1619_v25 }
 0x4ba   : > { %v2484_v27 = vpop.eup %2483 }
 0x4bb   : > { %v1621_v28 = vmul.f32 %v2482_v24, %v1620_v26  ;;  %v1793_v29 = vmul.f32 %v2484_v27, %v1791_v21 }
 0x4bd   : > { %v1622_v30 = vmul.f32 %v3114_v41, %v1621_v28  ;;  %v1794_v31 = vsub.f32 2.0, %v1793_v29 }
 0x4bf   : > { %v1795_v33 = vmul.f32 %v2484_v27, %v1794_v31  ;;  %2287 = vmatmul.mubr.msk.f32.vlgmr.msra.gmra.mrb[16].mxu1 %vm569_vm3, %v1622_v30 }
 0x4c0   : > { %2295 = vmatpush3.msra.mxu1 %v1798_v32  ;;  %2296 = vmatprep.mubr.msk.f32.mxu1 %vm2704_vm0, %v2705_v1 }
 0x4c1   : > { %v1796_v34 = vmul.f32 %v3118_v43, %v1795_v33 }
 0x4c3   : > { %2297 = vmatmul.mubr.msk.f32.vlgmr.msra.gmra.mrb[18].mxu1 %vm569_vm3, %v1796_v34 }
 0x500   : > { %v656_v35 = vpop.f32.mrb[4].mxu1 }
 0x501   : > { %660 = vst.msk [vmem:[#allocation2] sm:$0xff] %vm492_vm2, %v656_v35  ;;  %v2228_v36 = vpop.f32.mrb[5].mxu1 }
 0x551   : > { %v825_v37 = vpop.f32.mrb[6].mxu1 }
 0x552   : > { %830 = vrot.lane.b32.xlu0 %v825_v37, %s2721_s16  ;;  %v2238_v38 = vpop.f32.mrb[7].mxu1  ;;  %s2607_s16 = scalar_lea.vmem %s2606_s7, 256 }
 0x553   : > { %p2609_p9 = scmp.lt.s32.totalorder %s2607_s16, %s2601_s28 }
 0x555   : > { %v999_v39 = vpop.f32.mrb[8].mxu1  ;;  %p2610_p5 = por %p2609_p9, %p2608_p4 }
 0x556   : > { %1004 = vrot.lane.b32.xlu1 %v999_v39, %s2722_s10  ;;  %v2248_v40 = vpop.f32.mrb[9].mxu1 }
 0x557   : > { %p2611_p7 = pnand %p2610_p5, %p2604_p3 }
 0x559   : > { %v1173_v41 = vpop.f32.mrb[10].mxu1 }
 0x55a   : > { %1178 = vrot.lane.b32.xlu0 %v1173_v41, %s2723_s24  ;;  %v2258_v1 = vpop.f32.mrb[11].mxu1 }
 0x55d   : > { %v1347_v42 = vpop.f32.mrb[12].mxu1 }
 0x55e   : > { %1352 = vrot.lane.b32.xlu1 %v1347_v42, %s2724_s26  ;;  %v2268_v43 = vpop.f32.mrb[13].mxu1 }
 0x561   : > { %v1521_v44 = vpop.f32.mrb[14].mxu1 }
 0x562   : > { %1526 = vrot.lane.b32.xlu0 %v1521_v44, %s2725_s29  ;;  %v2278_v45 = vpop.f32.mrb[15].mxu1 }
 0x592   : > { %v1695_v52 = vpop.f32.mrb[16].mxu1 }
 0x593   : > { %1700 = vrot.lane.b32.xlu1 %v1695_v52, %s2726_s9  ;;  %v2288_v53 = vpop.f32.mrb[17].mxu1 }
 0x596   : > { %v1869_v54 = vpop.f32.mrb[18].mxu1 }
 0x597   : > { %1874 = vrot.lane.b32.xlu0 %v1869_v54, %s2727_s11  ;;  %v2298_v55 = vpop.f32.mrb[19].mxu1 }
 0x5c4   : > { %v831_v56 = vpop.permute.xlu0 %830 }
 0x5c5   : > { %834 = vst.msk [vmem:[#allocation2] sm:$0xff] %vm833_vm4, %v831_v56 }
 0x5c8   : > { %v1005_v57 = vpop.permute.xlu1 %1004 }
 0x5c9   : > { %1008 = vst.msk [vmem:[#allocation2] sm:$0xff] %vm1007_vm5, %v1005_v57 }
 0x5cc   : > { %v1179_v58 = vpop.permute.xlu0 %1178 }
 0x5cd   : > { %1182 = vst.msk [vmem:[#allocation2] sm:$0xff] %vm1181_vm6, %v1179_v58 }
 0x5d0   : > { %v1353_v0 = vpop.permute.xlu1 %1352 }
 0x5d1   : > { %1356 = vst.msk [vmem:[#allocation2] sm:$0xff] %vm1355_vm7, %v1353_v0 }
 0x5d4   : > { %v1527_v59 = vpop.permute.xlu0 %1526 }
 0x5d5   : > { %1530 = vst.msk [vmem:[#allocation2] sm:$0xff] %vm1529_vm8, %v1527_v59 }
 0x605   : > { %v1701_v60 = vpop.permute.xlu1 %1700 }
 0x606   : > { %1704 = vst.msk [vmem:[#allocation2] sm:$0xff] %vm1703_vm9, %v1701_v60 }
 0x609   : > { %v1875_v61 = vpop.permute.xlu0 %1874 }
 0x60a   : > { %1878 = vst.msk [vmem:[#allocation2] sm:$0xff] %vm1877_vm10, %v1875_v61 }
 0x611   : > { %v1879_v62 = vld [vmem:[#allocation2] sm:$0xff] }
 0x612   : > { %2308 = vmatmul.mubr.msk.f32.vlgmr.msra.gmra.mrb[16].mxu0 %vm329_vm1, %v1879_v62 }
 0x6e5   : > { %v1960_v22 = vpop.f32.mrb[16].mxu0 }
 0x6e6   : > { %v1961_v2 = vadd.f32 %v2144_v63, %v1960_v22  ;;  %v2309_v3 = vpop.f32.mrb[17].mxu0 }
 0x6e8   : > { %1964 = vst.msk [vmem:[%s322_s8] sm:$0xff] %vm329_vm1, %v1961_v2 }
 0x6e9   : > { %2614 = shalt.err (!%p2611_p7)
}
 0x6ea   : > { %s2615_s3 = scalar_lea.hbm %s3171_s13, 128  ;;  %s2619_s26 = scalar_lea.hbm %s3226_s5, 256 }
 0x6eb   : > { %p2616_p13 = scmp.ne.s32.totalorder %s3171_s13, %s2615_s3  ;;  %p2620_p2 = scmp.lt.u32.totalorder %s3171_s13, %s3226_s5 }
 0x6ec   : > { %p2621_p12 = scmp.lt.u32.totalorder %s2619_s26, %s2615_s3  ;;  %p2623_p1 = scmp.lt.u32.totalorder %s2615_s3, %s3171_s13 }
 0x6ed   : > { %p2617_p8 = pnand %p2616_p13, %p3252_p6 }
 0x6ee   : > { %p2622_p0 = por %p2621_p12, %p2620_p2 }
 0x6ef   : > { %p2618_p11 = pneg %p2617_p8 }
 0x6f0   : > { %p2624_p10 = por %p2623_p1, %p2622_p0 }
 0x6f2   : > { %p2625_p3 = pnand %p2624_p10, %p2618_p11 }
 0x6f4   : > { %2628 = shalt.err (!%p2625_p3)
}
 0x6f5   : > { %2340 = dma.vmem_to_hbm [thread:$0]  (%p3252_p6), %s3173_s14, 128, %s3171_s13, %s1966_s15  }
 0x6f6 PF: > { %s1992_s11 = sand.u32 1, %s2675_s18   ;;  %p3253_p4 = scmp.ne.s32.totalorder %s3237_s27, 0 }
 0x6f7   : > { %p3254_p9 = scmp.ge.s32.totalorder %s2695_s23, 2  ;;  %s1993_s2 = scalar_lea.sflag [#allocation5], %s1992_s11 }
 0x6f9   : > { %p2357_p5 = pnand %p3254_p9, %p3253_p4 }
 0x6fb   : > { %2670 = dma.done.wait (!%p2357_p5), %s1993_s2, 128  }
 0x6fc   : > { %2672 = vsyncadd (!%p2357_p5), %s1993_s2, 4294967168  ;;  %s25_s23 = sadd.s32 1, %s2695_s23   ;;  %s3255_s21 = sld [smem:[#allocation17_spill]] }
 0x6fd   : > { %p22_p7 = scmp.ge.s32.totalorder %s25_s23, 4   ;;  %s3256_s22 = sld [smem:[#allocation18_spill]] }
 0x6fe   : > { %s3257_s18 = smov %s2679_s19  ;;  %s3258_s19 = smov %s2683_s20 }
 0x6ff   : > { %s3259_s20 = smov %s2899_s25  ;;  %24 = sbr.rel (!%p22_p7) target bundleno = 12 (0xc), region = 106 }
 0x706   :  { %1998 = vsyncpa [#allocation4], 1 }
 0x707   :  { %2000 = vsyncpa [#allocation4 + $0x1], 1 }
 0x708   :  { %2001 = vsyncpa [#allocation7], 1 }
 0x709   :  { %2003 = vsyncpa [#allocation7 + $0x1], 1 }
 0x70a   :  { %2004 = vsyncpa [#allocation10], 1 }
 0x70b   :  { %2005 = vsyncpa [#allocation5], 1 }
 0x70c   :  { %2007 = vsyncpa [#allocation5 + $0x1], 1 }

</bundles_post_ra>
